<compile_context>
chip_gen: v6e
topology: v6e:2x2x1
jax: 0.10.0
libtpu: 0.0.40
codegen_flags: <defaults>
</compile_context>

<pallas_src>
import functools

import jax
import jax.numpy as jnp
from jax.experimental import pallas as pl
from jax.experimental.pallas import tpu as pltpu


def _round_up(x, m):
    return (x + m - 1) // m * m


def double_critic_q1_kernel(s_h_ref, s_ev_ref, a_ref,
                            w_h1_ref, w_ev_ref, w_a_ref,
                            w_q1a_top_ref, w_q1a_bot_ref,
                            w_q1b_ref, w_q1c_ref,
                            q1_ref):
    # feature_h_1 = tanh(s_h @ W_h1)                               -> [Bt, H/2]
    f_h = jnp.tanh(jnp.dot(s_h_ref[...], w_h1_ref[...],
                           preferred_element_type=jnp.float32))
    # feature_eva_1 = tanh(concat([s_ev, a]) @ W_eva1)
    #               = tanh(s_ev @ W_ev + a @ W_a)                  -> [Bt, H/2]
    f_e = jnp.tanh(
        jnp.dot(s_ev_ref[...], w_ev_ref[...],
                preferred_element_type=jnp.float32)
        + jnp.dot(a_ref[...], w_a_ref[...],
                  preferred_element_type=jnp.float32))
    # x @ W_q1a with x = concat([f_e, f_h*f_e], -1), concat eliminated:
    # two MXU pushes into the same f32 accumulator.                -> [Bt, H]
    h1_pre = (jnp.dot(f_e, w_q1a_top_ref[...],
                      preferred_element_type=jnp.float32)
              + jnp.dot(f_h * f_e, w_q1a_bot_ref[...],
                        preferred_element_type=jnp.float32))
    h1 = jnp.abs(jnp.tanh(h1_pre))
    h2 = jnp.abs(jnp.tanh(jnp.dot(h1, w_q1b_ref[...],
                                  preferred_element_type=jnp.float32)))
    # Final Linear(H, 1): VPU multiply + lane reduction instead of an N=1
    # MXU matmul. W_q1c is stored as a [1, H] row and broadcasts over Bt.
    q1_ref[...] = jnp.sum(h2 * w_q1c_ref[...], axis=-1, keepdims=True)


@functools.partial(jax.jit, static_argnames=("block_b",))
def double_critic_q1(s_h, s_ev, a, kparams, *, block_b=128):
    """Pallas forward for DoubleCritic.forward (Q1 head).

    kparams holds the split, [in, out]-layout weights (see prepare_params).
    """
    B = s_h.shape[0]
    H = kparams["w_q1b"].shape[0]
    half = H // 2
    s_ev_dim = s_ev.shape[-1]
    a_dim = a.shape[-1]

    # Batch tiling: tile size is a multiple of 8 (sublane), capped at block_b.
    bt = min(block_b, _round_up(B, 8))
    b_pad = _round_up(B, bt)
    if b_pad != B:
        pad = ((0, b_pad - B), (0, 0))
        s_h = jnp.pad(s_h, pad)
        s_ev = jnp.pad(s_ev, pad)
        a = jnp.pad(a, pad)
    grid = (b_pad // bt,)

    def batch_map(i):
        return (i, 0)

    def const_map(i):
        return (0, 0)

    in_specs = [
        pl.BlockSpec((bt, 2), batch_map),             # s_h
        pl.BlockSpec((bt, s_ev_dim), batch_map),      # s_ev
        pl.BlockSpec((bt, a_dim), batch_map),         # a
        pl.BlockSpec((2, half), const_map),           # w_h1       (resident)
        pl.BlockSpec((s_ev_dim, half), const_map),    # w_ev       (resident)
        pl.BlockSpec((a_dim, half), const_map),       # w_a        (resident)
        pl.BlockSpec((half, H), const_map),           # w_q1a_top  (resident)
        pl.BlockSpec((half, H), const_map),           # w_q1a_bot  (resident)
        pl.BlockSpec((H, H), const_map),              # w_q1b      (resident)
        pl.BlockSpec((1, H), const_map),              # w_q1c row  (resident)
    ]
    # (bt, 1) output tiles -> masked stores; negligible at these shapes.
    out_spec = pl.BlockSpec((bt, 1), batch_map)

    flops = (2 * b_pad * (2 + s_ev_dim + a_dim) * half   # feature matmuls
             + 2 * 2 * b_pad * half * H                   # q1a (two halves)
             + 2 * b_pad * H * H                          # q1b
             + 2 * b_pad * H                              # final reduce
             + 2 * b_pad * half)                          # f_h * f_e, abs
    transcendentals = 3 * b_pad * H                       # 2*(H/2) + 2*H tanh
    bytes_accessed = 4 * (b_pad * (2 + s_ev_dim + a_dim + 1)
                          + (2 + s_ev_dim + a_dim) * half
                          + 2 * H * H + H)

    q1 = pl.pallas_call(
        double_critic_q1_kernel,
        out_shape=jax.ShapeDtypeStruct((b_pad, 1), jnp.float32),
        grid=grid,
        in_specs=in_specs,
        out_specs=out_spec,
        compiler_params=pltpu.CompilerParams(
            dimension_semantics=("parallel",)),
        cost_estimate=pl.CostEstimate(
            flops=flops,
            transcendentals=transcendentals,
            bytes_accessed=bytes_accessed),
    )(s_h, s_ev, a,
      kparams["w_h1"], kparams["w_ev"], kparams["w_a"],
      kparams["w_q1a_top"], kparams["w_q1a_bot"],
      kparams["w_q1b"], kparams["w_q1c"])

    return q1[:B]


def init_params(key, hidden, s_ev_dim=3, a_dim=2):
    """nn.init.normal_(weight, std=0.1); stored transposed [in, out]."""
    half = hidden // 2
    ks = jax.random.split(key, 5)

    def w(k, out_f, in_f):
        # PyTorch weight shape is (out, in); transpose to (in, out) for x @ W.
        return (0.1 * jax.random.normal(k, (out_f, in_f), jnp.float32)).T

    return {
        "w_h1":   w(ks[0], half, 2),               # feature_h_1   Linear(2, H/2)
        "w_eva1": w(ks[1], half, s_ev_dim + a_dim),  # feature_eva_1 Linear(5, H/2)
        "w_q1a":  w(ks[2], hidden, hidden),
        "w_q1b":  w(ks[3], hidden, hidden),
        "w_q1c":  w(ks[4], 1, hidden),             # [H, 1]
    }


def prepare_params(params, s_ev_dim=3):
    """One-time split of the full weights into the kernel-friendly layout."""
    half = params["w_h1"].shape[1]
    return {
        "w_h1": params["w_h1"],
        "w_ev": params["w_eva1"][:s_ev_dim, :],     # [3, H/2]
        "w_a": params["w_eva1"][s_ev_dim:, :],      # [2, H/2]
        "w_q1a_top": params["w_q1a"][:half, :],     # rows hit by f_e
        "w_q1a_bot": params["w_q1a"][half:, :],     # rows hit by f_h * f_e
        "w_q1b": params["w_q1b"],
        "w_q1c": params["w_q1c"].T,                 # [1, H] row for VPU reduce
    }


def reference_q1(s_h, s_ev, a, params):
    """Pure-JAX reference matching the PyTorch forward."""
    s_eva = jnp.concatenate([s_ev, a], axis=-1)
    f_h = jnp.tanh(s_h @ params["w_h1"])
    f_e = jnp.tanh(s_eva @ params["w_eva1"])
    x = jnp.concatenate([f_e, f_h * f_e], axis=-1)
    h1 = jnp.abs(jnp.tanh(x @ params["w_q1a"]))
    h2 = jnp.abs(jnp.tanh(h1 @ params["w_q1b"]))
    return h2 @ params["w_q1c"]


if __name__ == "__main__":
    key = jax.random.PRNGKey(0)
    k_params, k_sh, k_sev, k_a = jax.random.split(key, 4)

    batch = 8
    hidden = 32
    s_ev_dim, a_dim = 3, 2           # s_ev_dim + a_dim == 5 (feature_eva_1 input)

    params = init_params(k_params, hidden, s_ev_dim, a_dim)
    kparams = prepare_params(params, s_ev_dim)

    s_h = jax.random.normal(k_sh, (batch, 2), jnp.float32)
    s_ev = jax.random.normal(k_sev, (batch, s_ev_dim), jnp.float32)
    a = jax.random.normal(k_a, (batch, a_dim), jnp.float32)

    q1 = double_critic_q1(s_h, s_ev, a, kparams)
    jax.block_until_ready(q1)

    q1_ref = reference_q1(s_h, s_ev, a, params)
    assert q1.shape == (batch, 1)
    assert jnp.allclose(q1, q1_ref, atol=1e-5, rtol=1e-5)

    print("KERNEL_OK")
</pallas_src>

<mosaic_0001>
module attributes {stable_mosaic.version = 11 : i64} {
  func.func @double_critic_q1_kernel(%arg0: i32, %arg1: memref<8x2xf32, #tpu.memory_space<vmem>>, %arg2: memref<8x3xf32, #tpu.memory_space<vmem>>, %arg3: memref<8x2xf32, #tpu.memory_space<vmem>>, %arg4: memref<2x16xf32, #tpu.memory_space<vmem>>, %arg5: memref<3x16xf32, #tpu.memory_space<vmem>>, %arg6: memref<2x16xf32, #tpu.memory_space<vmem>>, %arg7: memref<16x32xf32, #tpu.memory_space<vmem>>, %arg8: memref<16x32xf32, #tpu.memory_space<vmem>>, %arg9: memref<32x32xf32, #tpu.memory_space<vmem>>, %arg10: memref<1x32xf32, #tpu.memory_space<vmem>>, %arg11: memref<8x1xf32, #tpu.memory_space<vmem>>) attributes {dimension_semantics = [#tpu.dimension_semantics<parallel>], iteration_bounds = array<i64: 1>, scalar_prefetch = 0 : i64, scratch_operands = 0 : i64, tpu.core_type = #tpu.core_type<tc>, window_params = [{transform_indices = @transform_0, window_bounds = array<i64: 8, 2>}, {transform_indices = @transform_1, window_bounds = array<i64: 8, 3>}, {transform_indices = @transform_2, window_bounds = array<i64: 8, 2>}, {pipeline_mode = #tpu.pipeline_mode<synchronous>, transform_indices = @transform_3, window_bounds = array<i64: 2, 16>}, {pipeline_mode = #tpu.pipeline_mode<synchronous>, transform_indices = @transform_4, window_bounds = array<i64: 3, 16>}, {pipeline_mode = #tpu.pipeline_mode<synchronous>, transform_indices = @transform_5, window_bounds = array<i64: 2, 16>}, {pipeline_mode = #tpu.pipeline_mode<synchronous>, transform_indices = @transform_6, window_bounds = array<i64: 16, 32>}, {pipeline_mode = #tpu.pipeline_mode<synchronous>, transform_indices = @transform_7, window_bounds = array<i64: 16, 32>}, {pipeline_mode = #tpu.pipeline_mode<synchronous>, transform_indices = @transform_8, window_bounds = array<i64: 32, 32>}, {pipeline_mode = #tpu.pipeline_mode<synchronous>, transform_indices = @transform_9, window_bounds = array<i64: 1, 32>}, {transform_indices = @transform_10, window_bounds = array<i64: 8, 1>}]} {
    %c0 = arith.constant 0 : index
    %c0_0 = arith.constant 0 : index
    %0 = vector.load %arg1[%c0, %c0_0] : memref<8x2xf32, #tpu.memory_space<vmem>>, vector<8x2xf32>
    %c0_1 = arith.constant 0 : index
    %c0_2 = arith.constant 0 : index
    %1 = vector.load %arg4[%c0_1, %c0_2] : memref<2x16xf32, #tpu.memory_space<vmem>>, vector<2x16xf32>
    %cst = arith.constant dense<0.000000e+00> : vector<8x16xf32>
    %2 = tpu.matmul %0, %1, %cst {dimension_numbers = #tpu.dot_dimension_numbers<[1], [0], [0], [1], [0, 0, 1, 1], [], []>} : vector<8x2xf32>, vector<2x16xf32>, vector<8x16xf32> -> vector<8x16xf32>
    %3 = math.tanh %2 : vector<8x16xf32>
    %c0_3 = arith.constant 0 : index
    %c0_4 = arith.constant 0 : index
    %4 = vector.load %arg2[%c0_3, %c0_4] : memref<8x3xf32, #tpu.memory_space<vmem>>, vector<8x3xf32>
    %c0_5 = arith.constant 0 : index
    %c0_6 = arith.constant 0 : index
    %5 = vector.load %arg5[%c0_5, %c0_6] : memref<3x16xf32, #tpu.memory_space<vmem>>, vector<3x16xf32>
    %cst_7 = arith.constant dense<0.000000e+00> : vector<8x16xf32>
    %6 = tpu.matmul %4, %5, %cst_7 {dimension_numbers = #tpu.dot_dimension_numbers<[1], [0], [0], [1], [0, 0, 1, 1], [], []>} : vector<8x3xf32>, vector<3x16xf32>, vector<8x16xf32> -> vector<8x16xf32>
    %c0_8 = arith.constant 0 : index
    %c0_9 = arith.constant 0 : index
    %7 = vector.load %arg3[%c0_8, %c0_9] : memref<8x2xf32, #tpu.memory_space<vmem>>, vector<8x2xf32>
    %c0_10 = arith.constant 0 : index
    %c0_11 = arith.constant 0 : index
    %8 = vector.load %arg6[%c0_10, %c0_11] : memref<2x16xf32, #tpu.memory_space<vmem>>, vector<2x16xf32>
    %cst_12 = arith.constant dense<0.000000e+00> : vector<8x16xf32>
    %9 = tpu.matmul %7, %8, %cst_12 {dimension_numbers = #tpu.dot_dimension_numbers<[1], [0], [0], [1], [0, 0, 1, 1], [], []>} : vector<8x2xf32>, vector<2x16xf32>, vector<8x16xf32> -> vector<8x16xf32>
    %10 = arith.addf %6, %9 : vector<8x16xf32>
    %11 = math.tanh %10 : vector<8x16xf32>
    %c0_13 = arith.constant 0 : index
    %c0_14 = arith.constant 0 : index
    %12 = vector.load %arg7[%c0_13, %c0_14] : memref<16x32xf32, #tpu.memory_space<vmem>>, vector<16x32xf32>
    %cst_15 = arith.constant dense<0.000000e+00> : vector<8x32xf32>
    %13 = tpu.matmul %11, %12, %cst_15 {dimension_numbers = #tpu.dot_dimension_numbers<[1], [0], [0], [1], [0, 0, 1, 1], [], []>} : vector<8x16xf32>, vector<16x32xf32>, vector<8x32xf32> -> vector<8x32xf32>
    %14 = arith.mulf %3, %11 : vector<8x16xf32>
    %c0_16 = arith.constant 0 : index
    %c0_17 = arith.constant 0 : index
    %15 = vector.load %arg8[%c0_16, %c0_17] : memref<16x32xf32, #tpu.memory_space<vmem>>, vector<16x32xf32>
    %cst_18 = arith.constant dense<0.000000e+00> : vector<8x32xf32>
    %16 = tpu.matmul %14, %15, %cst_18 {dimension_numbers = #tpu.dot_dimension_numbers<[1], [0], [0], [1], [0, 0, 1, 1], [], []>} : vector<8x16xf32>, vector<16x32xf32>, vector<8x32xf32> -> vector<8x32xf32>
    %17 = arith.addf %13, %16 : vector<8x32xf32>
    %18 = math.tanh %17 : vector<8x32xf32>
    %19 = math.absf %18 : vector<8x32xf32>
    %c0_19 = arith.constant 0 : index
    %c0_20 = arith.constant 0 : index
    %20 = vector.load %arg9[%c0_19, %c0_20] : memref<32x32xf32, #tpu.memory_space<vmem>>, vector<32x32xf32>
    %cst_21 = arith.constant dense<0.000000e+00> : vector<8x32xf32>
    %21 = tpu.matmul %19, %20, %cst_21 {dimension_numbers = #tpu.dot_dimension_numbers<[1], [0], [0], [1], [0, 0, 1, 1], [], []>} : vector<8x32xf32>, vector<32x32xf32>, vector<8x32xf32> -> vector<8x32xf32>
    %22 = math.tanh %21 : vector<8x32xf32>
    %23 = math.absf %22 : vector<8x32xf32>
    %c0_22 = arith.constant 0 : index
    %c0_23 = arith.constant 0 : index
    %24 = vector.load %arg10[%c0_22, %c0_23] : memref<1x32xf32, #tpu.memory_space<vmem>>, vector<1x32xf32>
    %25 = vector.broadcast %24 : vector<1x32xf32> to vector<8x32xf32>
    %26 = arith.mulf %23, %25 : vector<8x32xf32>
    %cst_24 = arith.constant dense<0.000000e+00> : vector<8xf32>
    %27 = vector.multi_reduction <add>, %26, %cst_24 [1] : vector<8x32xf32> to vector<8xf32>
    %28 = vector.shape_cast %27 : vector<8xf32> to vector<8x1xf32>
    %c0_25 = arith.constant 0 : index
    %c0_26 = arith.constant 0 : index
    %29 = vector.load %arg11[%c0_25, %c0_26] : memref<8x1xf32, #tpu.memory_space<vmem>>, vector<8x1xf32>
    tpu.vector_store %arg11[%c0_25, %c0_26], %28 {strides = array<i32>} : memref<8x1xf32, #tpu.memory_space<vmem>>, vector<8x1xf32>,
    return
  }
  func.func @transform_0(%arg0: i32) -> (i32, i32) {
    %c0_i32 = arith.constant 0 : i32
    %c0_i32_0 = arith.constant 0 : i32
    return %arg0, %c0_i32 : i32, i32
  }
  func.func @transform_1(%arg0: i32) -> (i32, i32) {
    %c0_i32 = arith.constant 0 : i32
    %c0_i32_0 = arith.constant 0 : i32
    return %arg0, %c0_i32 : i32, i32
  }
  func.func @transform_2(%arg0: i32) -> (i32, i32) {
    %c0_i32 = arith.constant 0 : i32
    %c0_i32_0 = arith.constant 0 : i32
    return %arg0, %c0_i32 : i32, i32
  }
  func.func @transform_3(%arg0: i32) -> (i32, i32) {
    %c0_i32 = arith.constant 0 : i32
    %c0_i32_0 = arith.constant 0 : i32
    %c0_i32_1 = arith.constant 0 : i32
    return %c0_i32, %c0_i32_0 : i32, i32
  }
  func.func @transform_4(%arg0: i32) -> (i32, i32) {
    %c0_i32 = arith.constant 0 : i32
    %c0_i32_0 = arith.constant 0 : i32
    %c0_i32_1 = arith.constant 0 : i32
    return %c0_i32, %c0_i32_0 : i32, i32
  }
  func.func @transform_5(%arg0: i32) -> (i32, i32) {
    %c0_i32 = arith.constant 0 : i32
    %c0_i32_0 = arith.constant 0 : i32
    %c0_i32_1 = arith.constant 0 : i32
    return %c0_i32, %c0_i32_0 : i32, i32
  }
  func.func @transform_6(%arg0: i32) -> (i32, i32) {
    %c0_i32 = arith.constant 0 : i32
    %c0_i32_0 = arith.constant 0 : i32
    %c0_i32_1 = arith.constant 0 : i32
    return %c0_i32, %c0_i32_0 : i32, i32
  }
  func.func @transform_7(%arg0: i32) -> (i32, i32) {
    %c0_i32 = arith.constant 0 : i32
    %c0_i32_0 = arith.constant 0 : i32
    %c0_i32_1 = arith.constant 0 : i32
    return %c0_i32, %c0_i32_0 : i32, i32
  }
  func.func @transform_8(%arg0: i32) -> (i32, i32) {
    %c0_i32 = arith.constant 0 : i32
    %c0_i32_0 = arith.constant 0 : i32
    %c0_i32_1 = arith.constant 0 : i32
    return %c0_i32, %c0_i32_0 : i32, i32
  }
  func.func @transform_9(%arg0: i32) -> (i32, i32) {
    %c0_i32 = arith.constant 0 : i32
    %c0_i32_0 = arith.constant 0 : i32
    %c0_i32_1 = arith.constant 0 : i32
    return %c0_i32, %c0_i32_0 : i32, i32
  }
  func.func @transform_10(%arg0: i32) -> (i32, i32) {
    %c0_i32 = arith.constant 0 : i32
    %c0_i32_0 = arith.constant 0 : i32
    return %arg0, %c0_i32 : i32, i32
  }
}

</mosaic_0001>

<bundles_post_ra>
// kernel: double_critic_q1.1
= control target key start
LH: loop header
LB: loop body
LE: loop exit
PB: predicated region body
PF: predicated region fallthrough
CT: control target
= control target key end

     0   :  { %15 = vsyncpa [#allocation3], 0  ;;  %s790_s0 = inlined_call_operand.vmem [shape: f32[8,2], index: 0, kind: input, shape index: {}]   ;;  %s791_s1 = inlined_call_operand.vmem [shape: f32[8,3], index: 1, kind: input, shape index: {}]   ;;  %s792_s2 = inlined_call_operand.vmem [shape: f32[8,2], index: 2, kind: input, shape index: {}]   ;;  %s793_s3 = inlined_call_operand.vmem [shape: f32[2,16], index: 3, kind: input, shape index: {}]   ;;  %s794_s4 = inlined_call_operand.vmem [shape: f32[3,16], index: 4, kind: input, shape index: {}]   ;;  %s795_s5 = inlined_call_operand.vmem [shape: f32[2,16], index: 5, kind: input, shape index: {}]   ;;  %s796_s6 = inlined_call_operand.hbm [shape: f32[16,32], index: 6, kind: input, shape index: {}]   ;;  %s797_s7 = inlined_call_operand.hbm [shape: f32[16,32], index: 7, kind: input, shape index: {}]   ;;  %s798_s8 = inlined_call_operand.vmem [shape: f32[32,32], index: 8, kind: input, shape index: {}]   ;;  %s799_s9 = inlined_call_operand.vmem [shape: f32[1,32], index: 9, kind: input, shape index: {}]   ;;  %s800_s10 = inlined_call_operand.vmem [shape: f32[8,1], index: 10, kind: output, shape index: {}]  }
   0x1   :  { %16 = vsyncpa [#allocation5], 0  ;;  %s681_s13 = smov [#allocation2]  }
   0x2   :  { %s34_s14 = sshll.u32 %s681_s13, 4  ;;  %s35_s14 = int_to_ptr.vmem [resolvable:$true] %s34_s14 }
   0x3   :  { %s645_s15 = scalar_lea.vmem %s35_s14, 256  ;;  %p650_p1 = scmp.lt.s32.totalorder %s35_s14, %s35_s14 }
   0x4   :  { %p646_p0 = scmp.ne.s32.totalorder %s35_s14, %s645_s15  ;;  %p651_p2 = scmp.lt.s32.totalorder %s645_s15, %s645_s15 }
   0x6   :  { %p652_p3 = por %p651_p2, %p650_p1 }
   0x8   :  { %p653_p4 = pnand %p652_p3, %p646_p0 }
   0xa   :  { %656 = shalt.err (!%p653_p4)
}
   0xb   :  { %s682_s16 = smov 128   ;;  %s683_s17 = smov 8  }
   0xc   :  { %40 = dma.hbm_to_vmem [thread:$0]  %s796_s6, 256, %s35_s14, [#allocation3], %s682_s16, %s682_s16, %s683_s17  }
   0xd   :  { %s684_s20 = smov [#allocation4]  }
   0xe   :  { %s46_s21 = sshll.u32 %s684_s20, 4  ;;  %s47_s21 = int_to_ptr.vmem [resolvable:$true] %s46_s21 }
   0xf   :  { %s665_s22 = scalar_lea.vmem %s47_s21, 256  ;;  %p670_p6 = scmp.lt.s32.totalorder %s47_s21, %s47_s21 }
  0x10   :  { %p666_p5 = scmp.ne.s32.totalorder %s47_s21, %s665_s22  ;;  %p671_p7 = scmp.lt.s32.totalorder %s665_s22, %s665_s22 }
  0x12   :  { %p672_p8 = por %p671_p7, %p670_p6 }
  0x14   :  { %p673_p9 = pnand %p672_p8, %p666_p5 }
  0x16   :  { %676 = shalt.err (!%p673_p9)
}
  0x17   :  { %52 = dma.hbm_to_vmem [thread:$0]  %s797_s7, 256, %s47_s21, [#allocation5], %s682_s16, %s682_s16, %s683_s17  }
  0x18   :  { %677 = dma.done.wait [#allocation3], 256  }
  0x19   :  { %678 = vsyncadd [#allocation3], 4294967040 }
  0x1a   :  { %679 = dma.done.wait [#allocation5], 256  }
  0x1b   :  { %680 = vsyncadd [#allocation5], 4294967040  ;;  %v685_v0 = vmov 0.0   ;;  %vm686_vm0 = vmmov 0   ;;  %vm69_vm1 = vcmask 1041408   ;;  %vm65_vm2 = vcmask 15360  }
  0x1c   :  { %583 = vmatprep.subr.mxu0 %v685_v0  ;;  %585 = vmatprep.mubr.msk.f32.mxu0 %vm686_vm0, %v685_v0  ;;  %v64_v1 = vld [vmem:[%s793_s3] sm:$0x3]  ;;  %vm228_vm3 = vcmask 1042432   ;;  %vm224_vm4 = vcmask 23552   ;;  %v304_v7 = vld [vmem:[#allocation2 + $0x8] sm:$0xff]  ;;  %v307_v8 = vld [vmem:[#allocation4 + $0x8] sm:$0xff] }
  0x1d   :  { %588 = vmatprep.subr.mxu1 %v685_v0  ;;  %590 = vmatprep.mubr.msk.f32.mxu1 %vm686_vm0, %v685_v0  ;;  %v63_v2 = vld [vmem:[%s790_s0] sm:$0xff]  ;;  %v306_v10 = vld [vmem:[#allocation4] sm:$0xff]  ;;  %vm308_vm5 = vcmask 130048   ;;  %v460_v21 = vld [vmem:[%s798_s8 + $0x18] sm:$0xff]  ;;  %vm461_vm6 = vcmask 261120   ;;  %vm548_vm7 = vcmask 7168  }
  0x1e   :  { %v145_v3 = vld [vmem:[%s794_s4] sm:$0x7]  ;;  %584 = vmatpush3.msk.msra.mxu0 %vm69_vm1, %v64_v1  ;;  %v459_v22 = vld [vmem:[%s798_s8 + $0x10] sm:$0xff]  ;;  %v458_v23 = vld [vmem:[%s798_s8 + $0x8] sm:$0xff] }
  0x1f   :  { %v147_v4 = vld [vmem:[%s795_s5] sm:$0x3]  ;;  %586 = vmatmul.mubr.msk.f32.vlgmr.msra.gmra.mxu0 %vm65_vm2, %v63_v2  ;;  %593 = vmatprep.subr.mxu0 %v685_v0 }
  0x20   :  { %v146_v5 = vld [vmem:[%s792_s2] sm:$0xff]  ;;  %594 = vmatpush3.msk.msra.mxu0 %vm228_vm3, %v145_v3  ;;  %589 = vmatpush3.msk.msra.mxu1 %vm69_vm1, %v147_v4 }
  0x21   :  { %v144_v6 = vld [vmem:[%s791_s1] sm:$0xff]  ;;  %591 = vmatmul.mubr.msk.f32.vlgmr.msra.gmra.mxu1 %vm65_vm2, %v146_v5  ;;  %595 = vmatprep.mubr.msk.f32.mxu0 %vm686_vm0, %v685_v0 }
  0x22   :  { %605 = vmatprep.subr.mxu0 %v685_v0  ;;  %598 = vmatprep.subr.mxu1 %v685_v0  ;;  %v303_v9 = vld [vmem:[#allocation2] sm:$0xff] }
  0x23   :  { %596 = vmatmul.mubr.msk.f32.vlgmr.msra.gmra.mxu0 %vm224_vm4, %v144_v6  ;;  %602 = vmatprep.mubr.msk.f32.mxu1 %vm686_vm0, %v685_v0  ;;  %v457_v24 = vld [vmem:[%s798_s8] sm:$0xff] }
  0x24   :  { %609 = vmatprep.mubr.msk.f32.mxu0 %vm686_vm0, %v685_v0  ;;  %606 = vmatpush3.msra.mxu0 %v304_v7  ;;  %v565_v35 = vld [vmem:[%s799_s9] ss:$0 sm:$0xff] }
  0x25   :  { %599 = vmatpush3.msra.mxu1 %v307_v8  ;;  %607 = vmatprep.subr.mxu0 %v685_v0 }
  0x26   :  { %600 = vmatprep.subr.mxu1 %v685_v0  ;;  %608 = vmatpush3.msra.mxu0 %v303_v9 }
  0x27   :  { %601 = vmatpush3.msra.mxu1 %v306_v10 }
  0x28   :  { %612 = vmatprep.subr.mxu1 %v685_v0 }
  0xdf   :  { %v139_v11 = vpop.f32.mrf.mxu0 }
  0xe0   :  { %629 = vtanh.f32 %v139_v11 }
  0xe1   :  { %v587_v12 = vpop.f32.mrf.mxu0  ;;  %v220_v13 = vpop.f32.mrf.mxu1 }
  0xe3   :  { %v298_v14 = vpop.f32.mrf.mxu0  ;;  %v592_v15 = vpop.f32.mrf.mxu1 }
  0xe4   :  { %v299_v16 = vadd.f32 %v298_v14, %v220_v13 }
  0xe5   :  { %v597_v17 = vpop.f32.mrf.mxu0 }
  0xe6   :  { %631 = vtanh.f32 %v299_v16 }
  0xed   :  { %v630_v18 = vpop.eup %629 }
  0xf3   :  { %v632_v19 = vpop.eup %631 }
  0xf4   :  { %610 = vmatmul.mubr.msk.f32.vlgmr.msra.gmra.mxu0 %vm308_vm5, %v632_v19  ;;  %v305_v20 = vmul.f32 %v632_v19, %v630_v18 }
  0xf6   :  { %603 = vmatmul.mubr.msk.f32.vlgmr.msra.gmra.mxu1 %vm308_vm5, %v305_v20 }
  0xf7   :  { %620 = vmatprep.mubr.msk.f32.mxu1 %vm686_vm0, %v685_v0  ;;  %613 = vmatpush3.msra.mxu1 %v460_v21 }
  0xf8   :  { %614 = vmatprep.subr.mxu1 %v685_v0 }
  0xf9   :  { %615 = vmatpush3.msra.mxu1 %v459_v22 }
  0xfa   :  { %616 = vmatprep.subr.mxu1 %v685_v0 }
  0xfb   :  { %617 = vmatpush3.msra.mxu1 %v458_v23 }
  0xfc   :  { %618 = vmatprep.subr.mxu1 %v685_v0 }
  0xfd   :  { %619 = vmatpush3.msra.mxu1 %v457_v24 }
 0x1b4   :  { %v451_v25 = vpop.f32.mrf.mxu0 }
 0x1b6   :  { %v378_v26 = vpop.f32.mrf.mxu1  ;;  %v611_v27 = vpop.f32.mrf.mxu0 }
 0x1b7   :  { %v452_v28 = vadd.f32 %v451_v25, %v378_v26 }
 0x1b8   :  { %v604_v29 = vpop.f32.mrf.mxu1 }
 0x1b9   :  { %633 = vtanh.f32 %v452_v28 }
 0x1c6   :  { %v634_v30 = vpop.eup %633 }
 0x1c7   :  { %v456_v31 = vand.u32 2147483647, %v634_v30 }
 0x1c9   :  { %621 = vmatmul.mubr.msk.f32.vlgmr.msra.gmra.mxu1 %vm461_vm6, %v456_v31 }
 0x289   :  { %v531_v32 = vpop.f32.mrf.mxu1 }
 0x28a   :  { %635 = vtanh.f32 %v531_v32 }
 0x28b   :  { %v622_v33 = vpop.f32.mrf.mxu1 }
 0x297   :  { %v636_v34 = vpop.eup %635 }
 0x298   :  { %v536_v36 = vand.u32 2147483647, %v636_v34 }
 0x29a   :  { %v544_v37 = vmul.f32 %v565_v35, %v536_v36 }
 0x29c   :  { %v545_v38 = vsel %vm461_vm6, %v544_v37, 0.0 }
 0x29d   :  { %546 = vadd.xlane.f32.xlu0 %v545_v38 }
 0x326   :  { %v547_v39 = vpop.xlane.xlu0 %546 }
 0x327   :  { %549 = vst.msk [vmem:[%s800_s10] sm:$0xff] %vm548_vm7, %v547_v39 }
 0x328   :  { %554 = vsyncpa [#allocation3], 1 }
 0x329   :  { %555 = vsyncpa [#allocation5], 1 }

</bundles_post_ra>
